<compile_context>
chip_gen: v5e
topology: v5e:2x2
jax: 0.10.0
libtpu: 0.0.40
codegen_flags: <defaults>
</compile_context>

<pallas_src>
import functools

import jax
import jax.numpy as jnp
from jax import lax
from jax.experimental import pallas as pl
from jax.experimental.pallas import tpu as pltpu


def dls_kernel(x_ref, w_ih_ref, w_hh_ref, b_ref, post_a_ref, post_b_ref,
               w_fc_ref, b_fc_ref, out_ref, xg_ref, *, seq_len, batch):
    # x_ref:      (S*B, Din)  time-major input, row = t*B + b
    # w_ih_ref:   (Din, 4H)   input->gates weight, columns [i|f|g|o], i/f/o cols pre-scaled by 0.5
    # w_hh_ref:   (H, 4H)     recurrent weight slab, same column layout & pre-scale
    # b_ref:      (1, 4H)     (b_ih + b_hh) with the same pre-scale
    # post_a_ref: (1, 4H)     post-tanh scale  (0.5 for i/f/o, 1.0 for g)
    # post_b_ref: (1, 4H)     post-tanh offset (0.5 for i/f/o, 0.0 for g)
    # w_fc_ref:   (H, O)      fc weight (transposed)
    # b_fc_ref:   (1, O)      fc bias
    # out_ref:    (B, O)      softmax portfolio weights
    # xg_ref:     (S, B, 4H)  VMEM scratch for the hoisted input projection
    S, B = seq_len, batch
    H4 = w_hh_ref.shape[1]
    H = H4 // 4

    # ---- Hoisted input projection: one MXU pass, entirely off the serial chain. ----
    xg = (jnp.dot(x_ref[...], w_ih_ref[...], preferred_element_type=jnp.float32)
          + b_ref[...])                                            # (S*B, 4H)
    # Stage per-timestep slabs into the 3-D scratch ONCE, outside the recurrence, so each
    # step is a clean (B, 4H) tile load (no per-step sublane slicing competing for slots).
    for t in range(S):
        xg_ref[t] = xg[t * B:(t + 1) * B, :]

    w_hh = w_hh_ref[...]        # (H, 4H) fused recurrent slab, hoisted load
    a_post = post_a_ref[...]    # (1, 4H) lane constants, hoisted
    b_post = post_b_ref[...]

    h = jnp.zeros((B, H), jnp.float32)
    c = jnp.zeros((B, H), jnp.float32)

    # ---- Fully unrolled recurrence: 1 matmul + 1 fused tanh per timestep. ----
    for t in range(S):
        z = xg_ref[t] + jnp.dot(h, w_hh, preferred_element_type=jnp.float32)   # (B, 4H)
        # i/f/o columns carry a folded 0.5 pre-scale, so a single tanh + one FMA gives
        # [sigmoid(z_i), sigmoid(z_f), tanh(z_g), sigmoid(z_o)] across all 4H lanes.
        act = jnp.tanh(z) * a_post + b_post
        i_g = act[:, 0 * H:1 * H]
        f_g = act[:, 1 * H:2 * H]
        g_g = act[:, 2 * H:3 * H]
        o_g = act[:, 3 * H:4 * H]
        c = f_g * c + i_g * g_g
        h = o_g * jnp.tanh(c)

    # ---- Final Linear + numerically stable softmax (once, off the per-step chain). ----
    logits = jnp.dot(h, w_fc_ref[...], preferred_element_type=jnp.float32) + b_fc_ref[...]
    m = jnp.max(logits, axis=1, keepdims=True)
    e = jnp.exp(logits - m)
    out_ref[...] = e / jnp.sum(e, axis=1, keepdims=True)


def prepare_params(params):
    """One-time weight layout prep (off the per-inference-call path)."""
    w_ih, w_hh = params["w_ih"], params["w_hh"]        # (4H, Din), (4H, H)
    b_ih, b_hh = params["b_ih"], params["b_hh"]        # (4H,)
    w_fc, b_fc = params["w_fc"], params["b_fc"]        # (O, H), (O,)
    H = w_hh.shape[1]
    O = w_fc.shape[0]
    half = jnp.full((H,), 0.5, jnp.float32)
    one = jnp.ones((H,), jnp.float32)
    zero = jnp.zeros((H,), jnp.float32)
    # Pre-scale for the fused single-tanh activation: sigmoid(z) = 0.5*tanh(0.5*z) + 0.5.
    # Gate order [i | f | g | o]; only g (tanh gate) is left unscaled.
    pre = jnp.concatenate([half, half, one, half])      # (4H,) folded into weights/bias
    post_a = jnp.concatenate([half, half, one, half]).reshape(1, 4 * H)
    post_b = jnp.concatenate([half, half, zero, half]).reshape(1, 4 * H)
    return {
        # (Din, 4H): transposed torch weight_ih_l0, i/f/o columns pre-scaled by 0.5
        "w_ih_t": (jnp.transpose(w_ih).astype(jnp.float32) * pre[None, :]),
        # (H, 4H): fused recurrent slab (single MXU matmul per timestep), same pre-scale
        "w_hh_t": (jnp.transpose(w_hh).astype(jnp.float32) * pre[None, :]),
        # folded + pre-scaled bias (1, 4H)
        "b": ((b_ih + b_hh).astype(jnp.float32) * pre).reshape(1, 4 * H),
        "post_a": post_a,
        "post_b": post_b,
        # (H, O) and (1, O)
        "w_fc_t": jnp.transpose(w_fc).astype(jnp.float32),
        "b_fc": b_fc.reshape(1, O).astype(jnp.float32),
    }


def dls_forward(x, prepped):
    """x: (batch, seq, input_dim) float32, batch-first like the PyTorch module."""
    B, S, Din = x.shape
    H4 = prepped["w_hh_t"].shape[1]
    O = prepped["w_fc_t"].shape[1]

    # Only per-call layout work: batch-first -> time-major 2-D slab (S*B, Din).
    x2d = jnp.transpose(x, (1, 0, 2)).reshape(S * B, Din).astype(jnp.float32)

    vmem = pl.BlockSpec(memory_space=pltpu.MemorySpace.VMEM)
    kernel = functools.partial(dls_kernel, seq_len=S, batch=B)
    # Whole problem (~20 KB) lives in VMEM; single grid point, no tiling/pipelining needed
    # on any generation (latency-bound on the serial recurrence, not capacity/bandwidth).
    return pl.pallas_call(
        kernel,
        out_shape=jax.ShapeDtypeStruct((B, O), jnp.float32),
        in_specs=[vmem] * 8,
        out_specs=vmem,
        scratch_shapes=[pltpu.VMEM((S, B, H4), jnp.float32)],
    )(x2d, prepped["w_ih_t"], prepped["w_hh_t"], prepped["b"],
      prepped["post_a"], prepped["post_b"], prepped["w_fc_t"], prepped["b_fc"])


def dls_reference(x, params):
    """Pure-JAX reference of the PyTorch forward (correctness check)."""
    w_ih, w_hh, b_ih, b_hh, w_fc, b_fc = (
        params["w_ih"], params["w_hh"], params["b_ih"],
        params["b_hh"], params["w_fc"], params["b_fc"],
    )
    H = w_hh.shape[1]
    B, S, _ = x.shape

    def cell(carry, x_t):
        h, c = carry
        gates = x_t @ w_ih.T + b_ih + h @ w_hh.T + b_hh
        i_g = jax.nn.sigmoid(gates[:, 0 * H:1 * H])
        f_g = jax.nn.sigmoid(gates[:, 1 * H:2 * H])
        g_g = jnp.tanh(gates[:, 2 * H:3 * H])
        o_g = jax.nn.sigmoid(gates[:, 3 * H:4 * H])
        c_new = f_g * c + i_g * g_g
        h_new = o_g * jnp.tanh(c_new)
        return (h_new, c_new), h_new

    h0 = jnp.zeros((B, H), jnp.float32)
    (h_T, _), _ = lax.scan(cell, (h0, h0), jnp.transpose(x, (1, 0, 2)))
    logits = h_T @ w_fc.T + b_fc
    return jax.nn.softmax(logits, axis=1)


def init_params(key, input_dim, hidden_dim, output_dim):
    # PyTorch default LSTM/Linear init: U(-1/sqrt(H), 1/sqrt(H)). Deterministic via PRNGKey.
    k = jax.random.split(key, 6)
    s = 1.0 / jnp.sqrt(hidden_dim)
    u = lambda kk, shape: jax.random.uniform(kk, shape, jnp.float32, -s, s)
    return {
        "w_ih": u(k[0], (4 * hidden_dim, input_dim)),
        "w_hh": u(k[1], (4 * hidden_dim, hidden_dim)),
        "b_ih": u(k[2], (4 * hidden_dim,)),
        "b_hh": u(k[3], (4 * hidden_dim,)),
        "w_fc": u(k[4], (output_dim, hidden_dim)),
        "b_fc": u(k[5], (output_dim,)),
    }


if __name__ == "__main__":
    # config: hidden_dim=32, output_dim=4 (assets) -> input_dim=8, single LSTM layer.
    # TODO(synk): num_layers > 1 (stacked LSTM with inter-layer dropout) not implemented.
    batch, seq_len = 2, 8
    hidden_dim, output_dim = 32, 4
    input_dim = 2 * output_dim

    key = jax.random.PRNGKey(0)
    k_x, k_p = jax.random.split(key)
    x = jax.random.normal(k_x, (batch, seq_len, input_dim), jnp.float32)
    params = init_params(k_p, input_dim, hidden_dim, output_dim)

    prepped = prepare_params(params)          # one-time layout prep
    fwd = jax.jit(dls_forward)

    out = jax.block_until_ready(fwd(x, prepped))
    ref = jax.block_until_ready(dls_reference(x, params))

    assert out.shape == (batch, output_dim)
    assert jnp.allclose(jnp.sum(out, axis=1), 1.0, atol=1e-5)
    assert jnp.allclose(out, ref, atol=1e-4, rtol=1e-4)

    print("KERNEL_OK")
</pallas_src>

<mosaic_0001>
module attributes {stable_mosaic.version = 11 : i64} {
  func.func @dls_kernel(%arg0: memref<16x8xf32, #tpu.memory_space<vmem>>, %arg1: memref<8x128xf32, #tpu.memory_space<vmem>>, %arg2: memref<32x128xf32, #tpu.memory_space<vmem>>, %arg3: memref<1x128xf32, #tpu.memory_space<vmem>>, %arg4: memref<1x128xf32, #tpu.memory_space<vmem>>, %arg5: memref<1x128xf32, #tpu.memory_space<vmem>>, %arg6: memref<32x4xf32, #tpu.memory_space<vmem>>, %arg7: memref<1x4xf32, #tpu.memory_space<vmem>>, %arg8: memref<2x4xf32, #tpu.memory_space<vmem>>, %arg9: memref<8x2x128xf32, #tpu.memory_space<vmem>>) attributes {dimension_semantics = [], scalar_prefetch = 0 : i64, scratch_operands = 1 : i64, tpu.core_type = #tpu.core_type<tc>} {
    %c0 = arith.constant 0 : index
    %c0_0 = arith.constant 0 : index
    %0 = vector.load %arg0[%c0, %c0_0] : memref<16x8xf32, #tpu.memory_space<vmem>>, vector<16x8xf32>
    %c0_1 = arith.constant 0 : index
    %c0_2 = arith.constant 0 : index
    %1 = vector.load %arg1[%c0_1, %c0_2] : memref<8x128xf32, #tpu.memory_space<vmem>>, vector<8x128xf32>
    %cst = arith.constant dense<0.000000e+00> : vector<16x128xf32>
    %2 = tpu.matmul %0, %1, %cst {dimension_numbers = #tpu.dot_dimension_numbers<[1], [0], [0], [1], [0, 0, 1, 1], [], []>} : vector<16x8xf32>, vector<8x128xf32>, vector<16x128xf32> -> vector<16x128xf32>
    %c0_3 = arith.constant 0 : index
    %c0_4 = arith.constant 0 : index
    %3 = vector.load %arg3[%c0_3, %c0_4] : memref<1x128xf32, #tpu.memory_space<vmem>>, vector<1x128xf32>
    %4 = vector.broadcast %3 : vector<1x128xf32> to vector<16x128xf32>
    %5 = arith.addf %2, %4 : vector<16x128xf32>
    %6 = vector.extract_strided_slice %5 {offsets = [0, 0], sizes = [2, 128], strides = [1, 1]} : vector<16x128xf32> to vector<2x128xf32>
    %c0_5 = arith.constant 0 : index
    %c0_6 = arith.constant 0 : index
    %c0_7 = arith.constant 0 : index
    %7 = vector.load %arg9[%c0_5, %c0_6, %c0_7] : memref<8x2x128xf32, #tpu.memory_space<vmem>>, vector<1x2x128xf32>
    %8 = vector.shape_cast %7 : vector<1x2x128xf32> to vector<2x128xf32>
    %9 = vector.shape_cast %6 : vector<2x128xf32> to vector<1x2x128xf32>
    tpu.vector_store %arg9[%c0_5, %c0_6, %c0_7], %9 {strides = array<i32>} : memref<8x2x128xf32, #tpu.memory_space<vmem>>, vector<1x2x128xf32>,
    %10 = vector.extract_strided_slice %5 {offsets = [2, 0], sizes = [2, 128], strides = [1, 1]} : vector<16x128xf32> to vector<2x128xf32>
    %c1 = arith.constant 1 : index
    %c0_8 = arith.constant 0 : index
    %c0_9 = arith.constant 0 : index
    %11 = vector.load %arg9[%c1, %c0_8, %c0_9] : memref<8x2x128xf32, #tpu.memory_space<vmem>>, vector<1x2x128xf32>
    %12 = vector.shape_cast %11 : vector<1x2x128xf32> to vector<2x128xf32>
    %13 = vector.shape_cast %10 : vector<2x128xf32> to vector<1x2x128xf32>
    tpu.vector_store %arg9[%c1, %c0_8, %c0_9], %13 {strides = array<i32>} : memref<8x2x128xf32, #tpu.memory_space<vmem>>, vector<1x2x128xf32>,
    %14 = vector.extract_strided_slice %5 {offsets = [4, 0], sizes = [2, 128], strides = [1, 1]} : vector<16x128xf32> to vector<2x128xf32>
    %c2 = arith.constant 2 : index
    %c0_10 = arith.constant 0 : index
    %c0_11 = arith.constant 0 : index
    %15 = vector.load %arg9[%c2, %c0_10, %c0_11] : memref<8x2x128xf32, #tpu.memory_space<vmem>>, vector<1x2x128xf32>
    %16 = vector.shape_cast %15 : vector<1x2x128xf32> to vector<2x128xf32>
    %17 = vector.shape_cast %14 : vector<2x128xf32> to vector<1x2x128xf32>
    tpu.vector_store %arg9[%c2, %c0_10, %c0_11], %17 {strides = array<i32>} : memref<8x2x128xf32, #tpu.memory_space<vmem>>, vector<1x2x128xf32>,
    %18 = vector.extract_strided_slice %5 {offsets = [6, 0], sizes = [2, 128], strides = [1, 1]} : vector<16x128xf32> to vector<2x128xf32>
    %c3 = arith.constant 3 : index
    %c0_12 = arith.constant 0 : index
    %c0_13 = arith.constant 0 : index
    %19 = vector.load %arg9[%c3, %c0_12, %c0_13] : memref<8x2x128xf32, #tpu.memory_space<vmem>>, vector<1x2x128xf32>
    %20 = vector.shape_cast %19 : vector<1x2x128xf32> to vector<2x128xf32>
    %21 = vector.shape_cast %18 : vector<2x128xf32> to vector<1x2x128xf32>
    tpu.vector_store %arg9[%c3, %c0_12, %c0_13], %21 {strides = array<i32>} : memref<8x2x128xf32, #tpu.memory_space<vmem>>, vector<1x2x128xf32>,
    %22 = vector.extract_strided_slice %5 {offsets = [8, 0], sizes = [2, 128], strides = [1, 1]} : vector<16x128xf32> to vector<2x128xf32>
    %c4 = arith.constant 4 : index
    %c0_14 = arith.constant 0 : index
    %c0_15 = arith.constant 0 : index
    %23 = vector.load %arg9[%c4, %c0_14, %c0_15] : memref<8x2x128xf32, #tpu.memory_space<vmem>>, vector<1x2x128xf32>
    %24 = vector.shape_cast %23 : vector<1x2x128xf32> to vector<2x128xf32>
    %25 = vector.shape_cast %22 : vector<2x128xf32> to vector<1x2x128xf32>
    tpu.vector_store %arg9[%c4, %c0_14, %c0_15], %25 {strides = array<i32>} : memref<8x2x128xf32, #tpu.memory_space<vmem>>, vector<1x2x128xf32>,
    %26 = vector.extract_strided_slice %5 {offsets = [10, 0], sizes = [2, 128], strides = [1, 1]} : vector<16x128xf32> to vector<2x128xf32>
    %c5 = arith.constant 5 : index
    %c0_16 = arith.constant 0 : index
    %c0_17 = arith.constant 0 : index
    %27 = vector.load %arg9[%c5, %c0_16, %c0_17] : memref<8x2x128xf32, #tpu.memory_space<vmem>>, vector<1x2x128xf32>
    %28 = vector.shape_cast %27 : vector<1x2x128xf32> to vector<2x128xf32>
    %29 = vector.shape_cast %26 : vector<2x128xf32> to vector<1x2x128xf32>
    tpu.vector_store %arg9[%c5, %c0_16, %c0_17], %29 {strides = array<i32>} : memref<8x2x128xf32, #tpu.memory_space<vmem>>, vector<1x2x128xf32>,
    %30 = vector.extract_strided_slice %5 {offsets = [12, 0], sizes = [2, 128], strides = [1, 1]} : vector<16x128xf32> to vector<2x128xf32>
    %c6 = arith.constant 6 : index
    %c0_18 = arith.constant 0 : index
    %c0_19 = arith.constant 0 : index
    %31 = vector.load %arg9[%c6, %c0_18, %c0_19] : memref<8x2x128xf32, #tpu.memory_space<vmem>>, vector<1x2x128xf32>
    %32 = vector.shape_cast %31 : vector<1x2x128xf32> to vector<2x128xf32>
    %33 = vector.shape_cast %30 : vector<2x128xf32> to vector<1x2x128xf32>
    tpu.vector_store %arg9[%c6, %c0_18, %c0_19], %33 {strides = array<i32>} : memref<8x2x128xf32, #tpu.memory_space<vmem>>, vector<1x2x128xf32>,
    %34 = vector.extract_strided_slice %5 {offsets = [14, 0], sizes = [2, 128], strides = [1, 1]} : vector<16x128xf32> to vector<2x128xf32>
    %c7 = arith.constant 7 : index
    %c0_20 = arith.constant 0 : index
    %c0_21 = arith.constant 0 : index
    %35 = vector.load %arg9[%c7, %c0_20, %c0_21] : memref<8x2x128xf32, #tpu.memory_space<vmem>>, vector<1x2x128xf32>
    %36 = vector.shape_cast %35 : vector<1x2x128xf32> to vector<2x128xf32>
    %37 = vector.shape_cast %34 : vector<2x128xf32> to vector<1x2x128xf32>
    tpu.vector_store %arg9[%c7, %c0_20, %c0_21], %37 {strides = array<i32>} : memref<8x2x128xf32, #tpu.memory_space<vmem>>, vector<1x2x128xf32>,
    %c0_22 = arith.constant 0 : index
    %c0_23 = arith.constant 0 : index
    %38 = vector.load %arg2[%c0_22, %c0_23] : memref<32x128xf32, #tpu.memory_space<vmem>>, vector<32x128xf32>
    %c0_24 = arith.constant 0 : index
    %c0_25 = arith.constant 0 : index
    %39 = vector.load %arg4[%c0_24, %c0_25] : memref<1x128xf32, #tpu.memory_space<vmem>>, vector<1x128xf32>
    %c0_26 = arith.constant 0 : index
    %c0_27 = arith.constant 0 : index
    %40 = vector.load %arg5[%c0_26, %c0_27] : memref<1x128xf32, #tpu.memory_space<vmem>>, vector<1x128xf32>
    %cst_28 = arith.constant 0.000000e+00 : f32
    %41 = vector.broadcast %cst_28 : f32 to vector<2x32xf32>
    %cst_29 = arith.constant 0.000000e+00 : f32
    %42 = vector.broadcast %cst_29 : f32 to vector<2x32xf32>
    %c0_30 = arith.constant 0 : index
    %c0_31 = arith.constant 0 : index
    %c0_32 = arith.constant 0 : index
    %43 = vector.load %arg9[%c0_30, %c0_31, %c0_32] : memref<8x2x128xf32, #tpu.memory_space<vmem>>, vector<1x2x128xf32>
    %44 = vector.shape_cast %43 : vector<1x2x128xf32> to vector<2x128xf32>
    %cst_33 = arith.constant dense<0.000000e+00> : vector<2x128xf32>
    %45 = tpu.matmul %41, %38, %cst_33 {dimension_numbers = #tpu.dot_dimension_numbers<[1], [0], [0], [1], [0, 0, 1, 1], [], []>} : vector<2x32xf32>, vector<32x128xf32>, vector<2x128xf32> -> vector<2x128xf32>
    %46 = arith.addf %44, %45 : vector<2x128xf32>
    %47 = math.tanh %46 : vector<2x128xf32>
    %48 = vector.broadcast %39 : vector<1x128xf32> to vector<2x128xf32>
    %49 = arith.mulf %47, %48 : vector<2x128xf32>
    %50 = vector.broadcast %40 : vector<1x128xf32> to vector<2x128xf32>
    %51 = arith.addf %49, %50 : vector<2x128xf32>
    %52 = vector.extract_strided_slice %51 {offsets = [0, 0], sizes = [2, 32], strides = [1, 1]} : vector<2x128xf32> to vector<2x32xf32>
    %53 = vector.extract_strided_slice %51 {offsets = [0, 32], sizes = [2, 32], strides = [1, 1]} : vector<2x128xf32> to vector<2x32xf32>
    %54 = vector.extract_strided_slice %51 {offsets = [0, 64], sizes = [2, 32], strides = [1, 1]} : vector<2x128xf32> to vector<2x32xf32>
    %55 = vector.extract_strided_slice %51 {offsets = [0, 96], sizes = [2, 32], strides = [1, 1]} : vector<2x128xf32> to vector<2x32xf32>
    %56 = arith.mulf %53, %42 : vector<2x32xf32>
    %57 = arith.mulf %52, %54 : vector<2x32xf32>
    %58 = arith.addf %56, %57 : vector<2x32xf32>
    %59 = math.tanh %58 : vector<2x32xf32>
    %60 = arith.mulf %55, %59 : vector<2x32xf32>
    %c1_34 = arith.constant 1 : index
    %c0_35 = arith.constant 0 : index
    %c0_36 = arith.constant 0 : index
    %61 = vector.load %arg9[%c1_34, %c0_35, %c0_36] : memref<8x2x128xf32, #tpu.memory_space<vmem>>, vector<1x2x128xf32>
    %62 = vector.shape_cast %61 : vector<1x2x128xf32> to vector<2x128xf32>
    %cst_37 = arith.constant dense<0.000000e+00> : vector<2x128xf32>
    %63 = tpu.matmul %60, %38, %cst_37 {dimension_numbers = #tpu.dot_dimension_numbers<[1], [0], [0], [1], [0, 0, 1, 1], [], []>} : vector<2x32xf32>, vector<32x128xf32>, vector<2x128xf32> -> vector<2x128xf32>
    %64 = arith.addf %62, %63 : vector<2x128xf32>
    %65 = math.tanh %64 : vector<2x128xf32>
    %66 = vector.broadcast %39 : vector<1x128xf32> to vector<2x128xf32>
    %67 = arith.mulf %65, %66 : vector<2x128xf32>
    %68 = vector.broadcast %40 : vector<1x128xf32> to vector<2x128xf32>
    %69 = arith.addf %67, %68 : vector<2x128xf32>
    %70 = vector.extract_strided_slice %69 {offsets = [0, 0], sizes = [2, 32], strides = [1, 1]} : vector<2x128xf32> to vector<2x32xf32>
    %71 = vector.extract_strided_slice %69 {offsets = [0, 32], sizes = [2, 32], strides = [1, 1]} : vector<2x128xf32> to vector<2x32xf32>
    %72 = vector.extract_strided_slice %69 {offsets = [0, 64], sizes = [2, 32], strides = [1, 1]} : vector<2x128xf32> to vector<2x32xf32>
    %73 = vector.extract_strided_slice %69 {offsets = [0, 96], sizes = [2, 32], strides = [1, 1]} : vector<2x128xf32> to vector<2x32xf32>
    %74 = arith.mulf %71, %58 : vector<2x32xf32>
    %75 = arith.mulf %70, %72 : vector<2x32xf32>
    %76 = arith.addf %74, %75 : vector<2x32xf32>
    %77 = math.tanh %76 : vector<2x32xf32>
    %78 = arith.mulf %73, %77 : vector<2x32xf32>
    %c2_38 = arith.constant 2 : index
    %c0_39 = arith.constant 0 : index
    %c0_40 = arith.constant 0 : index
    %79 = vector.load %arg9[%c2_38, %c0_39, %c0_40] : memref<8x2x128xf32, #tpu.memory_space<vmem>>, vector<1x2x128xf32>
    %80 = vector.shape_cast %79 : vector<1x2x128xf32> to vector<2x128xf32>
    %cst_41 = arith.constant dense<0.000000e+00> : vector<2x128xf32>
    %81 = tpu.matmul %78, %38, %cst_41 {dimension_numbers = #tpu.dot_dimension_numbers<[1], [0], [0], [1], [0, 0, 1, 1], [], []>} : vector<2x32xf32>, vector<32x128xf32>, vector<2x128xf32> -> vector<2x128xf32>
    %82 = arith.addf %80, %81 : vector<2x128xf32>
    %83 = math.tanh %82 : vector<2x128xf32>
    %84 = vector.broadcast %39 : vector<1x128xf32> to vector<2x128xf32>
    %85 = arith.mulf %83, %84 : vector<2x128xf32>
    %86 = vector.broadcast %40 : vector<1x128xf32> to vector<2x128xf32>
    %87 = arith.addf %85, %86 : vector<2x128xf32>
    %88 = vector.extract_strided_slice %87 {offsets = [0, 0], sizes = [2, 32], strides = [1, 1]} : vector<2x128xf32> to vector<2x32xf32>
    %89 = vector.extract_strided_slice %87 {offsets = [0, 32], sizes = [2, 32], strides = [1, 1]} : vector<2x128xf32> to vector<2x32xf32>
    %90 = vector.extract_strided_slice %87 {offsets = [0, 64], sizes = [2, 32], strides = [1, 1]} : vector<2x128xf32> to vector<2x32xf32>
    %91 = vector.extract_strided_slice %87 {offsets = [0, 96], sizes = [2, 32], strides = [1, 1]} : vector<2x128xf32> to vector<2x32xf32>
    %92 = arith.mulf %89, %76 : vector<2x32xf32>
    %93 = arith.mulf %88, %90 : vector<2x32xf32>
    %94 = arith.addf %92, %93 : vector<2x32xf32>
    %95 = math.tanh %94 : vector<2x32xf32>
    %96 = arith.mulf %91, %95 : vector<2x32xf32>
    %c3_42 = arith.constant 3 : index
    %c0_43 = arith.constant 0 : index
    %c0_44 = arith.constant 0 : index
    %97 = vector.load %arg9[%c3_42, %c0_43, %c0_44] : memref<8x2x128xf32, #tpu.memory_space<vmem>>, vector<1x2x128xf32>
    %98 = vector.shape_cast %97 : vector<1x2x128xf32> to vector<2x128xf32>
    %cst_45 = arith.constant dense<0.000000e+00> : vector<2x128xf32>
    %99 = tpu.matmul %96, %38, %cst_45 {dimension_numbers = #tpu.dot_dimension_numbers<[1], [0], [0], [1], [0, 0, 1, 1], [], []>} : vector<2x32xf32>, vector<32x128xf32>, vector<2x128xf32> -> vector<2x128xf32>
    %100 = arith.addf %98, %99 : vector<2x128xf32>
    %101 = math.tanh %100 : vector<2x128xf32>
    %102 = vector.broadcast %39 : vector<1x128xf32> to vector<2x128xf32>
    %103 = arith.mulf %101, %102 : vector<2x128xf32>
    %104 = vector.broadcast %40 : vector<1x128xf32> to vector<2x128xf32>
    %105 = arith.addf %103, %104 : vector<2x128xf32>
    %106 = vector.extract_strided_slice %105 {offsets = [0, 0], sizes = [2, 32], strides = [1, 1]} : vector<2x128xf32> to vector<2x32xf32>
    %107 = vector.extract_strided_slice %105 {offsets = [0, 32], sizes = [2, 32], strides = [1, 1]} : vector<2x128xf32> to vector<2x32xf32>
    %108 = vector.extract_strided_slice %105 {offsets = [0, 64], sizes = [2, 32], strides = [1, 1]} : vector<2x128xf32> to vector<2x32xf32>
    %109 = vector.extract_strided_slice %105 {offsets = [0, 96], sizes = [2, 32], strides = [1, 1]} : vector<2x128xf32> to vector<2x32xf32>
    %110 = arith.mulf %107, %94 : vector<2x32xf32>
    %111 = arith.mulf %106, %108 : vector<2x32xf32>
    %112 = arith.addf %110, %111 : vector<2x32xf32>
    %113 = math.tanh %112 : vector<2x32xf32>
    %114 = arith.mulf %109, %113 : vector<2x32xf32>
    %c4_46 = arith.constant 4 : index
    %c0_47 = arith.constant 0 : index
    %c0_48 = arith.constant 0 : index
    %115 = vector.load %arg9[%c4_46, %c0_47, %c0_48] : memref<8x2x128xf32, #tpu.memory_space<vmem>>, vector<1x2x128xf32>
    %116 = vector.shape_cast %115 : vector<1x2x128xf32> to vector<2x128xf32>
    %cst_49 = arith.constant dense<0.000000e+00> : vector<2x128xf32>
    %117 = tpu.matmul %114, %38, %cst_49 {dimension_numbers = #tpu.dot_dimension_numbers<[1], [0], [0], [1], [0, 0, 1, 1], [], []>} : vector<2x32xf32>, vector<32x128xf32>, vector<2x128xf32> -> vector<2x128xf32>
    %118 = arith.addf %116, %117 : vector<2x128xf32>
    %119 = math.tanh %118 : vector<2x128xf32>
    %120 = vector.broadcast %39 : vector<1x128xf32> to vector<2x128xf32>
    %121 = arith.mulf %119, %120 : vector<2x128xf32>
    %122 = vector.broadcast %40 : vector<1x128xf32> to vector<2x128xf32>
    %123 = arith.addf %121, %122 : vector<2x128xf32>
    %124 = vector.extract_strided_slice %123 {offsets = [0, 0], sizes = [2, 32], strides = [1, 1]} : vector<2x128xf32> to vector<2x32xf32>
    %125 = vector.extract_strided_slice %123 {offsets = [0, 32], sizes = [2, 32], strides = [1, 1]} : vector<2x128xf32> to vector<2x32xf32>
    %126 = vector.extract_strided_slice %123 {offsets = [0, 64], sizes = [2, 32], strides = [1, 1]} : vector<2x128xf32> to vector<2x32xf32>
    %127 = vector.extract_strided_slice %123 {offsets = [0, 96], sizes = [2, 32], strides = [1, 1]} : vector<2x128xf32> to vector<2x32xf32>
    %128 = arith.mulf %125, %112 : vector<2x32xf32>
    %129 = arith.mulf %124, %126 : vector<2x32xf32>
    %130 = arith.addf %128, %129 : vector<2x32xf32>
    %131 = math.tanh %130 : vector<2x32xf32>
    %132 = arith.mulf %127, %131 : vector<2x32xf32>
    %c5_50 = arith.constant 5 : index
    %c0_51 = arith.constant 0 : index
    %c0_52 = arith.constant 0 : index
    %133 = vector.load %arg9[%c5_50, %c0_51, %c0_52] : memref<8x2x128xf32, #tpu.memory_space<vmem>>, vector<1x2x128xf32>
    %134 = vector.shape_cast %133 : vector<1x2x128xf32> to vector<2x128xf32>
    %cst_53 = arith.constant dense<0.000000e+00> : vector<2x128xf32>
    %135 = tpu.matmul %132, %38, %cst_53 {dimension_numbers = #tpu.dot_dimension_numbers<[1], [0], [0], [1], [0, 0, 1, 1], [], []>} : vector<2x32xf32>, vector<32x128xf32>, vector<2x128xf32> -> vector<2x128xf32>
    %136 = arith.addf %134, %135 : vector<2x128xf32>
    %137 = math.tanh %136 : vector<2x128xf32>
    %138 = vector.broadcast %39 : vector<1x128xf32> to vector<2x128xf32>
    %139 = arith.mulf %137, %138 : vector<2x128xf32>
    %140 = vector.broadcast %40 : vector<1x128xf32> to vector<2x128xf32>
    %141 = arith.addf %139, %140 : vector<2x128xf32>
    %142 = vector.extract_strided_slice %141 {offsets = [0, 0], sizes = [2, 32], strides = [1, 1]} : vector<2x128xf32> to vector<2x32xf32>
    %143 = vector.extract_strided_slice %141 {offsets = [0, 32], sizes = [2, 32], strides = [1, 1]} : vector<2x128xf32> to vector<2x32xf32>
    %144 = vector.extract_strided_slice %141 {offsets = [0, 64], sizes = [2, 32], strides = [1, 1]} : vector<2x128xf32> to vector<2x32xf32>
    %145 = vector.extract_strided_slice %141 {offsets = [0, 96], sizes = [2, 32], strides = [1, 1]} : vector<2x128xf32> to vector<2x32xf32>
    %146 = arith.mulf %143, %130 : vector<2x32xf32>
    %147 = arith.mulf %142, %144 : vector<2x32xf32>
    %148 = arith.addf %146, %147 : vector<2x32xf32>
    %149 = math.tanh %148 : vector<2x32xf32>
    %150 = arith.mulf %145, %149 : vector<2x32xf32>
    %c6_54 = arith.constant 6 : index
    %c0_55 = arith.constant 0 : index
    %c0_56 = arith.constant 0 : index
    %151 = vector.load %arg9[%c6_54, %c0_55, %c0_56] : memref<8x2x128xf32, #tpu.memory_space<vmem>>, vector<1x2x128xf32>
    %152 = vector.shape_cast %151 : vector<1x2x128xf32> to vector<2x128xf32>
    %cst_57 = arith.constant dense<0.000000e+00> : vector<2x128xf32>
    %153 = tpu.matmul %150, %38, %cst_57 {dimension_numbers = #tpu.dot_dimension_numbers<[1], [0], [0], [1], [0, 0, 1, 1], [], []>} : vector<2x32xf32>, vector<32x128xf32>, vector<2x128xf32> -> vector<2x128xf32>
    %154 = arith.addf %152, %153 : vector<2x128xf32>
    %155 = math.tanh %154 : vector<2x128xf32>
    %156 = vector.broadcast %39 : vector<1x128xf32> to vector<2x128xf32>
    %157 = arith.mulf %155, %156 : vector<2x128xf32>
    %158 = vector.broadcast %40 : vector<1x128xf32> to vector<2x128xf32>
    %159 = arith.addf %157, %158 : vector<2x128xf32>
    %160 = vector.extract_strided_slice %159 {offsets = [0, 0], sizes = [2, 32], strides = [1, 1]} : vector<2x128xf32> to vector<2x32xf32>
    %161 = vector.extract_strided_slice %159 {offsets = [0, 32], sizes = [2, 32], strides = [1, 1]} : vector<2x128xf32> to vector<2x32xf32>
    %162 = vector.extract_strided_slice %159 {offsets = [0, 64], sizes = [2, 32], strides = [1, 1]} : vector<2x128xf32> to vector<2x32xf32>
    %163 = vector.extract_strided_slice %159 {offsets = [0, 96], sizes = [2, 32], strides = [1, 1]} : vector<2x128xf32> to vector<2x32xf32>
    %164 = arith.mulf %161, %148 : vector<2x32xf32>
    %165 = arith.mulf %160, %162 : vector<2x32xf32>
    %166 = arith.addf %164, %165 : vector<2x32xf32>
    %167 = math.tanh %166 : vector<2x32xf32>
    %168 = arith.mulf %163, %167 : vector<2x32xf32>
    %c7_58 = arith.constant 7 : index
    %c0_59 = arith.constant 0 : index
    %c0_60 = arith.constant 0 : index
    %169 = vector.load %arg9[%c7_58, %c0_59, %c0_60] : memref<8x2x128xf32, #tpu.memory_space<vmem>>, vector<1x2x128xf32>
    %170 = vector.shape_cast %169 : vector<1x2x128xf32> to vector<2x128xf32>
    %cst_61 = arith.constant dense<0.000000e+00> : vector<2x128xf32>
    %171 = tpu.matmul %168, %38, %cst_61 {dimension_numbers = #tpu.dot_dimension_numbers<[1], [0], [0], [1], [0, 0, 1, 1], [], []>} : vector<2x32xf32>, vector<32x128xf32>, vector<2x128xf32> -> vector<2x128xf32>
    %172 = arith.addf %170, %171 : vector<2x128xf32>
    %173 = math.tanh %172 : vector<2x128xf32>
    %174 = vector.broadcast %39 : vector<1x128xf32> to vector<2x128xf32>
    %175 = arith.mulf %173, %174 : vector<2x128xf32>
    %176 = vector.broadcast %40 : vector<1x128xf32> to vector<2x128xf32>
    %177 = arith.addf %175, %176 : vector<2x128xf32>
    %178 = vector.extract_strided_slice %177 {offsets = [0, 0], sizes = [2, 32], strides = [1, 1]} : vector<2x128xf32> to vector<2x32xf32>
    %179 = vector.extract_strided_slice %177 {offsets = [0, 32], sizes = [2, 32], strides = [1, 1]} : vector<2x128xf32> to vector<2x32xf32>
    %180 = vector.extract_strided_slice %177 {offsets = [0, 64], sizes = [2, 32], strides = [1, 1]} : vector<2x128xf32> to vector<2x32xf32>
    %181 = vector.extract_strided_slice %177 {offsets = [0, 96], sizes = [2, 32], strides = [1, 1]} : vector<2x128xf32> to vector<2x32xf32>
    %182 = arith.mulf %179, %166 : vector<2x32xf32>
    %183 = arith.mulf %178, %180 : vector<2x32xf32>
    %184 = arith.addf %182, %183 : vector<2x32xf32>
    %185 = math.tanh %184 : vector<2x32xf32>
    %186 = arith.mulf %181, %185 : vector<2x32xf32>
    %c0_62 = arith.constant 0 : index
    %c0_63 = arith.constant 0 : index
    %187 = vector.load %arg6[%c0_62, %c0_63] : memref<32x4xf32, #tpu.memory_space<vmem>>, vector<32x4xf32>
    %cst_64 = arith.constant dense<0.000000e+00> : vector<2x4xf32>
    %188 = tpu.matmul %186, %187, %cst_64 {dimension_numbers = #tpu.dot_dimension_numbers<[1], [0], [0], [1], [0, 0, 1, 1], [], []>} : vector<2x32xf32>, vector<32x4xf32>, vector<2x4xf32> -> vector<2x4xf32>
    %c0_65 = arith.constant 0 : index
    %c0_66 = arith.constant 0 : index
    %189 = vector.load %arg7[%c0_65, %c0_66] : memref<1x4xf32, #tpu.memory_space<vmem>>, vector<1x4xf32>
    %190 = vector.broadcast %189 : vector<1x4xf32> to vector<2x4xf32>
    %191 = arith.addf %188, %190 : vector<2x4xf32>
    %cst_67 = arith.constant dense<0xFF800000> : vector<2xf32>
    %192 = vector.multi_reduction <maximumf>, %191, %cst_67 [1] : vector<2x4xf32> to vector<2xf32>
    %193 = vector.shape_cast %192 : vector<2xf32> to vector<2x1xf32>
    %194 = vector.broadcast %193 : vector<2x1xf32> to vector<2x4xf32>
    %195 = arith.subf %191, %194 : vector<2x4xf32>
    %196 = math.exp %195 : vector<2x4xf32>
    %cst_68 = arith.constant dense<0.000000e+00> : vector<2xf32>
    %197 = vector.multi_reduction <add>, %196, %cst_68 [1] : vector<2x4xf32> to vector<2xf32>
    %198 = vector.shape_cast %197 : vector<2xf32> to vector<2x1xf32>
    %199 = vector.broadcast %198 : vector<2x1xf32> to vector<2x4xf32>
    %200 = arith.divf %196, %199 : vector<2x4xf32>
    %c0_69 = arith.constant 0 : index
    %c0_70 = arith.constant 0 : index
    %201 = vector.load %arg8[%c0_69, %c0_70] : memref<2x4xf32, #tpu.memory_space<vmem>>, vector<2x4xf32>
    tpu.vector_store %arg8[%c0_69, %c0_70], %200 {strides = array<i32>} : memref<2x4xf32, #tpu.memory_space<vmem>>, vector<2x4xf32>,
    return
  }
}

</mosaic_0001>

<bundles_post_ra>
// kernel: dls_forward.1
= control target key start
LH: loop header
LB: loop body
LE: loop exit
PB: predicated region body
PF: predicated region fallthrough
CT: control target
= control target key end

     0   :  { %vm37_vm0 = vcmask 64512   ;;  %s790_s0 = inlined_call_operand.vmem [shape: f32[16,8], index: 0, kind: input, shape index: {}]   ;;  %s791_s1 = inlined_call_operand.vmem [shape: f32[8,128], index: 1, kind: input, shape index: {}]   ;;  %s792_s2 = inlined_call_operand.vmem [shape: f32[32,128], index: 2, kind: input, shape index: {}]   ;;  %s793_s3 = inlined_call_operand.vmem [shape: f32[1,128], index: 3, kind: input, shape index: {}]   ;;  %s794_s4 = inlined_call_operand.vmem [shape: f32[1,128], index: 4, kind: input, shape index: {}]   ;;  %s795_s5 = inlined_call_operand.vmem [shape: f32[1,128], index: 5, kind: input, shape index: {}]   ;;  %s796_s6 = inlined_call_operand.vmem [shape: f32[32,4], index: 6, kind: input, shape index: {}]   ;;  %s797_s7 = inlined_call_operand.vmem [shape: f32[1,4], index: 7, kind: input, shape index: {}]   ;;  %s798_s8 = inlined_call_operand.hbm [shape: f32[2,4], index: 8, kind: output, shape index: {}]  }
   0x1   :  { %v32_v0 = vld [vmem:[%s791_s1] sm:$0xff]  ;;  %v85_v2 = vld [vmem:[%s792_s2 + $0x18] sm:$0xff]  ;;  %v84_v3 = vld [vmem:[%s792_s2 + $0x10] sm:$0xff] }
   0x2   :  { %v30_v1 = vld [vmem:[%s790_s0] sm:$0xff]  ;;  %59 = vmatpush.msra.mxu0 %v32_v0  ;;  %105 = vmatpush.msra.mxu1 %v85_v2  ;;  %v83_v4 = vld [vmem:[%s792_s2 + $0x8] sm:$0xff] }
   0x3   :  { %544 = vmatmul.msk.f32.vlgmr.msra.gmra.mxu0 %vm37_vm0, %v30_v1  ;;  %158 = vmatpush.msra.mxu2 %v85_v2 }
   0x4   :  { %106 = vmatpush.msra.mxu1 %v84_v3  ;;  %205 = vmatpush.msra.mxu3 %v85_v2 }
   0x5   :  { %13 = vsyncpa [#allocation4], 0  ;;  %v82_v5 = vld [vmem:[%s792_s2] sm:$0xff]  ;;  %159 = vmatpush.msra.mxu2 %v84_v3  ;;  %393 = vmatpush.msrb.mxu0 %v85_v2  ;;  %v624_v6 = vmov 0.0   ;;  %s626_s21 = smov 32   ;;  %vm89_vm1 = vcmask 261120  }
   0x6   :  { %107 = vmatpush.msra.mxu1 %v83_v4  ;;  %206 = vmatpush.msra.mxu3 %v84_v3  ;;  %v695_v7 = vld [vmem:[%s793_s3] ss:$0 sm:$0xff]  ;;  %s625_s3 = smov 64   ;;  %vm502_vm2 = vcmask 25600   ;;  %s535_s11 = sshll.u32 %s798_s8, 4  ;;  %s536_s11 = int_to_ptr.hbm [resolvable:$true] %s535_s11 }
   0x7   :  { %160 = vmatpush.msra.mxu2 %v83_v4  ;;  %394 = vmatpush.msrb.mxu0 %v84_v3  ;;  %v701_v13 = vld [vmem:[%s794_s4] ss:$0 sm:$0xff] }
   0x8   :  { %108 = vmatpush.msra.mxu1 %v82_v5  ;;  %207 = vmatpush.msra.mxu3 %v83_v4  ;;  %v706_v14 = vld [vmem:[%s795_s5] ss:$0 sm:$0xff] }
   0x9   :  { %109 = vmatmul.f32.vlgmr.msra.gmra.mxu1 %v624_v6  ;;  %161 = vmatpush.msra.mxu2 %v82_v5 }
   0xa   :  { %208 = vmatpush.msra.mxu3 %v82_v5  ;;  %252 = vmatpush.msrb.mxu1 %v85_v2 }
   0xb   :  { %299 = vmatpush.msrb.mxu2 %v85_v2  ;;  %395 = vmatpush.msrb.mxu0 %v83_v4 }
   0xc   :  { %346 = vmatpush.msrb.mxu3 %v85_v2  ;;  %253 = vmatpush.msrb.mxu1 %v84_v3 }
   0xd   :  { %300 = vmatpush.msrb.mxu2 %v84_v3  ;;  %396 = vmatpush.msrb.mxu0 %v82_v5 }
   0xe   :  { %347 = vmatpush.msrb.mxu3 %v84_v3  ;;  %254 = vmatpush.msrb.mxu1 %v83_v4 }
   0xf   :  { %301 = vmatpush.msrb.mxu2 %v83_v4 }
  0x10   :  { %348 = vmatpush.msrb.mxu3 %v83_v4  ;;  %255 = vmatpush.msrb.mxu1 %v82_v5 }
  0x11   :  { %302 = vmatpush.msrb.mxu2 %v82_v5 }
  0x12   :  { %349 = vmatpush.msrb.mxu3 %v82_v5  ;;  %440 = vmatpush.msra.mxu1 %v85_v2 }
  0x14   :  { %441 = vmatpush.msra.mxu1 %v84_v3 }
  0x16   :  { %442 = vmatpush.msra.mxu1 %v83_v4 }
  0x18   :  { %443 = vmatpush.msra.mxu1 %v82_v5  ;;  %v31_v5 = vld [vmem:[%s790_s0 + $0x8] sm:$0xff] }
  0x19   :  { %545 = vmatmul.msk.f32.gmra.mxu0 %vm37_vm0, %v31_v5 }
  0x80   :  { %v61_v8 = vpop.f32.mrf.mxu0 }
  0x81   :  { %v62_v9 = vadd.f32 %v695_v7, %v61_v8 }
  0x83   :  { %67 = vst [vmem:[#allocation2] sm:$0xf] %v62_v9  }
  0x84   :  { %71 = vst [vmem:[#allocation2] sm:$0xf0] %v62_v9  }
  0x86   :  { %v110_v10 = vpop.f32.mrf.mxu1 }
  0x8a   :  { %v88_v11 = vld [vmem:[#allocation2] sm:$0x3]  ;;  %v140_v27 = vld [vmem:[#allocation2 + $0x2] sm:$0x3] }
  0x8b   :  { %v113_v12 = vadd.f32 %v110_v10, %v88_v11  ;;  %v187_v42 = vld [vmem:[#allocation2 + $0x4] sm:$0x3]  ;;  %v234_v57 = vld [vmem:[#allocation2 + $0x6] sm:$0x3] }
  0x8d   :  { %562 = vtanh.f32 %v113_v12 }
  0x93   :  { %v563_v15 = vpop.eup %562 }
  0x94   :  { %v118_v16 = vmul.f32 %v563_v15, %v701_v13 }
  0x96   :  { %v122_v17 = vadd.f32 %v706_v14, %v118_v16  ;;  %v64_v9 = vpop.f32.mrf.mxu0 }
  0x97   :  { %v65_v10 = vadd.f32 %v695_v7, %v64_v9 }
  0x98   :  { %125 = vrot.lane.b32.xlu0 %v122_v17, %s625_s3  ;;  %v123_v20 = vmul.f32 0.0, %v122_v17 }
  0x99   :  { %75 = vst [vmem:[#allocation2 + $0x8] sm:$0xf] %v65_v10  }
  0x9a   :  { %79 = vst [vmem:[#allocation2 + $0x8] sm:$0xf0] %v65_v10  }
  0xa0   :  { %v281_v12 = vld [vmem:[#allocation2 + $0x8] sm:$0x3] }
 0x10a   :  { %v126_v18 = vpop.permute.xlu0 %125 }
 0x10b   :  { %v128_v19 = vmul.f32 %v126_v18, %v122_v17 }
 0x10d   :  { %130 = vrot.lane.b32.xlu0 %v128_v19, %s626_s21 }
 0x17f   :  { %v131_v21 = vpop.permute.xlu0 %130 }
 0x180   :  { %v133_v22 = vadd.f32 %v131_v21, %v123_v20 }
 0x182   :  { %564 = vtanh.f32 %v133_v22 }
 0x188   :  { %v565_v23 = vpop.eup %564 }
 0x189   :  { %136 = vrot.lane.b32.xlu1 %v565_v23, %s625_s3 }
 0x1fb   :  { %v137_v24 = vpop.permute.xlu1 %136 }
 0x1fc   :  { %v139_v25 = vmul.f32 %v137_v24, %v122_v17 }
 0x1fe   :  { %142 = vrot.lane.b32.xlu1 %v139_v25, %s626_s21 }
 0x270   :  { %v143_v26 = vpop.permute.xlu1 %142 }
 0x271   :  { %546 = vmatmul.msk.f32.vlgmr.msra.gmra.mxu2 %vm89_vm1, %v143_v26 }
 0x2f4   :  { %v163_v28 = vpop.f32.mrf.mxu2 }
 0x2f5   :  { %v166_v29 = vadd.f32 %v163_v28, %v140_v27  ;;  %v328_v28 = vld [vmem:[#allocation2 + $0xa] sm:$0x3] }
 0x2f7   :  { %566 = vtanh.f32 %v166_v29 }
 0x2fd   :  { %v567_v30 = vpop.eup %566 }
 0x2fe   :  { %v168_v31 = vmul.f32 %v567_v30, %v701_v13 }
 0x300   :  { %v169_v32 = vadd.f32 %v706_v14, %v168_v31 }
 0x302   :  { %172 = vrot.lane.b32.xlu2 %v169_v32, %s625_s3  ;;  %v170_v35 = vmul.f32 %v169_v32, %v133_v22 }
 0x35c   :  { %v173_v33 = vpop.permute.xlu2 %172 }
 0x35d   :  { %v175_v34 = vmul.f32 %v173_v33, %v169_v32 }
 0x35f   :  { %177 = vrot.lane.b32.xlu2 %v175_v34, %s626_s21 }
 0x3b9   :  { %v178_v36 = vpop.permute.xlu2 %177 }
 0x3ba   :  { %v180_v37 = vadd.f32 %v178_v36, %v170_v35 }
 0x3bc   :  { %568 = vtanh.f32 %v180_v37 }
 0x3c2   :  { %v569_v38 = vpop.eup %568 }
 0x3c3   :  { %183 = vrot.lane.b32.xlu0 %v569_v38, %s625_s3 }
 0x435   :  { %v184_v39 = vpop.permute.xlu0 %183 }
 0x436   :  { %v186_v40 = vmul.f32 %v184_v39, %v169_v32 }
 0x438   :  { %189 = vrot.lane.b32.xlu1 %v186_v40, %s626_s21 }
 0x4aa   :  { %v190_v41 = vpop.permute.xlu1 %189 }
 0x4ab   :  { %547 = vmatmul.msk.f32.vlgmr.msra.gmra.mxu3 %vm89_vm1, %v190_v41 }
 0x52e   :  { %v210_v43 = vpop.f32.mrf.mxu3 }
 0x52f   :  { %v213_v44 = vadd.f32 %v210_v43, %v187_v42  ;;  %v375_v43 = vld [vmem:[#allocation2 + $0xc] sm:$0x3] }
 0x531   :  { %570 = vtanh.f32 %v213_v44 }
 0x537   :  { %v571_v45 = vpop.eup %570 }
 0x538   :  { %v215_v46 = vmul.f32 %v571_v45, %v701_v13 }
 0x53a   :  { %v216_v47 = vadd.f32 %v706_v14, %v215_v46 }
 0x53c   :  { %219 = vrot.lane.b32.xlu2 %v216_v47, %s625_s3  ;;  %v217_v50 = vmul.f32 %v216_v47, %v180_v37 }
 0x596   :  { %v220_v48 = vpop.permute.xlu2 %219 }
 0x597   :  { %v222_v49 = vmul.f32 %v220_v48, %v216_v47 }
 0x599   :  { %224 = vrot.lane.b32.xlu0 %v222_v49, %s626_s21 }
 0x60b   :  { %v225_v51 = vpop.permute.xlu0 %224 }
 0x60c   :  { %v227_v52 = vadd.f32 %v225_v51, %v217_v50 }
 0x60e   :  { %572 = vtanh.f32 %v227_v52 }
 0x614   :  { %v573_v53 = vpop.eup %572 }
 0x615   :  { %230 = vrot.lane.b32.xlu1 %v573_v53, %s625_s3 }
 0x687   :  { %v231_v54 = vpop.permute.xlu1 %230 }
 0x688   :  { %v233_v55 = vmul.f32 %v231_v54, %v216_v47 }
 0x68a   :  { %236 = vrot.lane.b32.xlu2 %v233_v55, %s626_s21 }
 0x6e4   :  { %v237_v56 = vpop.permute.xlu2 %236 }
 0x6e5   :  { %548 = vmatmul.msk.f32.vlgmr.msrb.gmra.mxu1 %vm89_vm1, %v237_v56 }
 0x762   :  { %v257_v58 = vpop.f32.mrf.mxu1 }
 0x763   :  { %v260_v59 = vadd.f32 %v257_v58, %v234_v57  ;;  %v422_v58 = vld [vmem:[#allocation2 + $0xe] sm:$0x3] }
 0x765   :  { %574 = vtanh.f32 %v260_v59 }
 0x76b   :  { %v575_v60 = vpop.eup %574 }
 0x76c   :  { %v262_v61 = vmul.f32 %v575_v60, %v701_v13 }
 0x76e   :  { %v263_v62 = vadd.f32 %v706_v14, %v262_v61 }
 0x770   :  { %266 = vrot.lane.b32.xlu0 %v263_v62, %s625_s3  ;;  %v264_v1 = vmul.f32 %v263_v62, %v227_v52 }
 0x7e2   :  { %v267_v63 = vpop.permute.xlu0 %266 }
 0x7e3   :  { %v269_v0 = vmul.f32 %v267_v63, %v263_v62 }
 0x7e5   :  { %271 = vrot.lane.b32.xlu1 %v269_v0, %s626_s21 }
 0x857   :  { %v272_v2 = vpop.permute.xlu1 %271 }
 0x858   :  { %v274_v3 = vadd.f32 %v272_v2, %v264_v1 }
 0x85a   :  { %576 = vtanh.f32 %v274_v3 }
 0x860   :  { %v577_v4 = vpop.eup %576 }
 0x861   :  { %277 = vrot.lane.b32.xlu2 %v577_v4, %s625_s3 }
 0x8bb   :  { %v278_v6 = vpop.permute.xlu2 %277 }
 0x8bc   :  { %v280_v8 = vmul.f32 %v278_v6, %v263_v62  ;;  %v472_v6 = vld [vmem:[%s796_s6 + $0x18] sm:$0xff] }
 0x8bd   :  { %494 = vmatpush.msra.mxu2 %v472_v6 }
 0x8be   :  { %283 = vrot.lane.b32.xlu0 %v280_v8, %s626_s21  ;;  %v469_v8 = vld [vmem:[%s796_s6] sm:$0xff] }
 0x930   :  { %v284_v11 = vpop.permute.xlu0 %283 }
 0x931   :  { %549 = vmatmul.msk.f32.vlgmr.msrb.gmra.mxu2 %vm89_vm1, %v284_v11 }
 0x9b4   :  { %v304_v15 = vpop.f32.mrf.mxu2 }
 0x9b5   :  { %v307_v16 = vadd.f32 %v304_v15, %v281_v12  ;;  %v561_v12 = vld [vmem:[%s797_s7] ss:$0 sm:$0xff] }
 0x9b7   :  { %578 = vtanh.f32 %v307_v16 }
 0x9bd   :  { %v579_v17 = vpop.eup %578 }
 0x9be   :  { %v309_v18 = vmul.f32 %v579_v17, %v701_v13 }
 0x9c0   :  { %v310_v19 = vadd.f32 %v706_v14, %v309_v18 }
 0x9c2   :  { %313 = vrot.lane.b32.xlu1 %v310_v19, %s625_s3  ;;  %v311_v7 = vmul.f32 %v310_v19, %v274_v3 }
 0xa34   :  { %v314_v20 = vpop.permute.xlu1 %313 }
 0xa35   :  { %v316_v21 = vmul.f32 %v314_v20, %v310_v19 }
 0xa37   :  { %318 = vrot.lane.b32.xlu2 %v316_v21, %s626_s21 }
 0xa91   :  { %v319_v22 = vpop.permute.xlu2 %318 }
 0xa92   :  { %v321_v23 = vadd.f32 %v319_v22, %v311_v7 }
 0xa94   :  { %580 = vtanh.f32 %v321_v23 }
 0xa9a   :  { %v581_v24 = vpop.eup %580 }
 0xa9b   :  { %324 = vrot.lane.b32.xlu0 %v581_v24, %s625_s3 }
 0xb0d   :  { %v325_v25 = vpop.permute.xlu0 %324 }
 0xb0e   :  { %v327_v26 = vmul.f32 %v325_v25, %v310_v19 }
 0xb10   :  { %330 = vrot.lane.b32.xlu1 %v327_v26, %s626_s21 }
 0xb82   :  { %v331_v27 = vpop.permute.xlu1 %330 }
 0xb83   :  { %550 = vmatmul.msk.f32.vlgmr.msrb.gmra.mxu3 %vm89_vm1, %v331_v27 }
 0xc06   :  { %v351_v29 = vpop.f32.mrf.mxu3 }
 0xc07   :  { %v354_v30 = vadd.f32 %v351_v29, %v328_v28 }
 0xc09   :  { %582 = vtanh.f32 %v354_v30 }
 0xc0f   :  { %v583_v31 = vpop.eup %582 }
 0xc10   :  { %v356_v32 = vmul.f32 %v583_v31, %v701_v13 }
 0xc12   :  { %v357_v33 = vadd.f32 %v706_v14, %v356_v32 }
 0xc14   :  { %360 = vrot.lane.b32.xlu2 %v357_v33, %s625_s3  ;;  %v358_v36 = vmul.f32 %v357_v33, %v321_v23 }
 0xc6e   :  { %v361_v34 = vpop.permute.xlu2 %360 }
 0xc6f   :  { %v363_v35 = vmul.f32 %v361_v34, %v357_v33 }
 0xc71   :  { %365 = vrot.lane.b32.xlu0 %v363_v35, %s626_s21 }
 0xce3   :  { %v366_v37 = vpop.permute.xlu0 %365 }
 0xce4   :  { %v368_v38 = vadd.f32 %v366_v37, %v358_v36 }
 0xce6   :  { %584 = vtanh.f32 %v368_v38 }
 0xcec   :  { %v585_v39 = vpop.eup %584 }
 0xced   :  { %371 = vrot.lane.b32.xlu1 %v585_v39, %s625_s3 }
 0xd5f   :  { %v372_v40 = vpop.permute.xlu1 %371 }
 0xd60   :  { %v374_v41 = vmul.f32 %v372_v40, %v357_v33 }
 0xd62   :  { %377 = vrot.lane.b32.xlu2 %v374_v41, %s626_s21 }
 0xdbc   :  { %v378_v42 = vpop.permute.xlu2 %377 }
 0xdbd   :  { %551 = vmatmul.msk.f32.vlgmr.msrb.gmra.mxu0 %vm89_vm1, %v378_v42 }
 0xe3a   :  { %v398_v44 = vpop.f32.mrf.mxu0 }
 0xe3b   :  { %v401_v45 = vadd.f32 %v398_v44, %v375_v43 }
 0xe3d   :  { %586 = vtanh.f32 %v401_v45 }
 0xe43   :  { %v587_v46 = vpop.eup %586 }
 0xe44   :  { %v403_v47 = vmul.f32 %v587_v46, %v701_v13 }
 0xe46   :  { %v404_v48 = vadd.f32 %v706_v14, %v403_v47 }
 0xe48   :  { %407 = vrot.lane.b32.xlu0 %v404_v48, %s625_s3  ;;  %v405_v51 = vmul.f32 %v404_v48, %v368_v38 }
 0xeba   :  { %v408_v49 = vpop.permute.xlu0 %407 }
 0xebb   :  { %v410_v50 = vmul.f32 %v408_v49, %v404_v48 }
 0xebd   :  { %412 = vrot.lane.b32.xlu1 %v410_v50, %s626_s21 }
 0xf2f   :  { %v413_v52 = vpop.permute.xlu1 %412 }
 0xf30   :  { %v415_v53 = vadd.f32 %v413_v52, %v405_v51 }
 0xf32   :  { %588 = vtanh.f32 %v415_v53 }
 0xf38   :  { %v589_v54 = vpop.eup %588 }
 0xf39   :  { %418 = vrot.lane.b32.xlu2 %v589_v54, %s625_s3 }
 0xf93   :  { %v419_v55 = vpop.permute.xlu2 %418 }
 0xf94   :  { %v421_v56 = vmul.f32 %v419_v55, %v404_v48 }
 0xf96   :  { %424 = vrot.lane.b32.xlu0 %v421_v56, %s626_s21 }
0x1008   :  { %v425_v57 = vpop.permute.xlu0 %424 }
0x1009   :  { %552 = vmatmul.msk.f32.vlgmr.msra.gmra.mxu1 %vm89_vm1, %v425_v57 }
0x1086   :  { %v445_v59 = vpop.f32.mrf.mxu1 }
0x1087   :  { %v448_v60 = vadd.f32 %v445_v59, %v422_v58 }
0x1089   :  { %590 = vtanh.f32 %v448_v60 }
0x108f   :  { %v591_v61 = vpop.eup %590 }
0x1090   :  { %v450_v62 = vmul.f32 %v591_v61, %v701_v13  ;;  %v471_v13 = vld [vmem:[%s796_s6 + $0x10] sm:$0xff] }
0x1091   :  { %495 = vmatpush.msra.mxu2 %v471_v13 }
0x1092   :  { %v451_v63 = vadd.f32 %v706_v14, %v450_v62  ;;  %v470_v14 = vld [vmem:[%s796_s6 + $0x8] sm:$0xff]  ;;  %s627_s6 = smov [#allocation3]  }
0x1093   :  { %496 = vmatpush.msra.mxu2 %v470_v14  ;;  %s533_s7 = sshll.u32 %s627_s6, 4  ;;  %s534_s7 = int_to_ptr.vmem [resolvable:$true] %s533_s7 }
0x1094   :  { %454 = vrot.lane.b32.xlu1 %v451_v63, %s625_s3  ;;  %v452_v2 = vmul.f32 %v451_v63, %v415_v53 }
0x1095   :  { %497 = vmatpush.msra.mxu2 %v469_v8 }
0x1106   :  { %v455_v0 = vpop.permute.xlu1 %454 }
0x1107   :  { %v457_v1 = vmul.f32 %v455_v0, %v451_v63 }
0x1109   :  { %459 = vrot.lane.b32.xlu2 %v457_v1, %s626_s21 }
0x1163   :  { %v460_v3 = vpop.permute.xlu2 %459 }
0x1164   :  { %v462_v4 = vadd.f32 %v460_v3, %v452_v2 }
0x1166   :  { %592 = vtanh.f32 %v462_v4 }
0x116c   :  { %v593_v5 = vpop.eup %592 }
0x116d   :  { %465 = vrot.lane.b32.xlu0 %v593_v5, %s625_s3 }
0x11df   :  { %v466_v9 = vpop.permute.xlu0 %465 }
0x11e0   :  { %v468_v10 = vmul.f32 %v466_v9, %v451_v63 }
0x11e2   :  { %478 = vrot.lane.b32.xlu1 %v468_v10, %s626_s21 }
0x1254   :  { %v479_v11 = vpop.permute.xlu1 %478 }
0x1255   :  { %553 = vmatmul.msk.f32.vlgmr.msra.gmra.mxu2 %vm89_vm1, %v479_v11 }
0x12d8   :  { %v499_v15 = vpop.f32.mrf.mxu2 }
0x12d9   :  { %v500_v16 = vadd.f32 %v561_v12, %v499_v15 }
0x12db   :  { %v503_v17 = vsel %vm502_vm2, %v500_v16, -inf }
0x12dc   :  { %504 = vmax.xlane.f32.xlu2 %v503_v17 }
0x134f   :  { %v505_v18 = vpop.xlane.xlu2 %504 }
0x1350   :  { %v506_v19 = vsub.f32 %v500_v16, %v505_v18 }
0x1352   :  { %v507_v20 = vmul.f32 1.442695, %v506_v19 }
0x1354   :  { %594 = vpow2.f32 %v507_v20 }
0x135a   :  { %v595_v21 = vpop.eup %594 }
0x135b   :  { %v509_v7 = vsel %vm502_vm2, %v595_v21, 0.0 }
0x135c   :  { %510 = vadd.xlane.f32.xlu0 %v509_v7 }
0x13cf   :  { %v511_v22 = vpop.xlane.xlu0 %510 }
0x13d0   :  { %596 = vrcp.f32 %v511_v22  ;;  %v523_v26 = vand.u32 2147483648, %v511_v22  ;;  %v521_v28 = vand.u32 2147483647, %v511_v22  ;;  %vm517_vm4 = vweird.f32 %v511_v22 }
0x13d2   :  { %v524_v30 = vor.u32 1.1754944e-38, %v523_v26  ;;  %vm522_vm6 = vcmp.eq.f32.partialorder %v521_v28, 8.507059e+37 }
0x13d6   :  { %v597_v23 = vpop.eup %596 }
0x13d7   :  { %v513_v24 = vmul.f32 %v597_v23, %v511_v22  ;;  %vm518_vm3 = vweird.f32 %v597_v23 }
0x13d8   :  { %vm519_vm5 = vmor %vm517_vm4, %vm518_vm3 }
0x13d9   :  { %v514_v25 = vsub.f32 1.0, %v513_v24 }
0x13db   :  { %v515_v27 = vmul.f32 %v597_v23, %v514_v25 }
0x13dd   :  { %v516_v29 = vadd.f32 %v597_v23, %v515_v27 }
0x13df   :  { %v520_v31 = vsel %vm519_vm5, %v597_v23, %v516_v29 }
0x13e0   :  { %v525_v32 = vsel %vm522_vm6, %v524_v30, %v520_v31 }
0x13e1   :  { %v526_v33 = vmul.f32 %v595_v21, %v525_v32 }
0x13e3   :  { %527 = vst.msk [vmem:[#allocation3] sm:$0x3] %vm502_vm2, %v526_v33 }
0x13e4   :  { %538 = dma.vmem_to_hbm [thread:$0]  %s534_s7, 32, %s536_s11, [#allocation4]  }
0x13e5   :  { %622 = dma.done.wait [#allocation4], 32  }
0x13e6   :  { %623 = vsyncadd [#allocation4], 4294967264 }
0x13e7   :  { %543 = vsyncpa [#allocation4], 1 }

</bundles_post_ra>
